<compile_context>
chip_gen: v6e
topology: v6e:2x2x1
jax: 0.10.0
libtpu: 0.0.40
codegen_flags: <defaults>
</compile_context>

<pallas_src>
import jax
import jax.numpy as jnp
from jax import lax
from jax.experimental import pallas as pl
from jax.experimental.pallas import tpu as pltpu


# ----------------------------------------------------------------------------
# Helpers
# ----------------------------------------------------------------------------
def _pick_batch_block(N, L, target_lanes=512):
    """Largest divisor NB of N such that NB*L is either a multiple of 128 or the
    full extent N*L (Mosaic block constraint) and stays <= target_lanes."""
    best = None
    for nb in range(1, N + 1):
        if N % nb:
            continue
        lanes = nb * L
        if lanes > max(target_lanes, L):
            continue
        if nb == N or lanes % 128 == 0:
            best = nb
    return best if best is not None else N


# ----------------------------------------------------------------------------
# Kernel A: bottleneck + fused conv branches + maxpool branch.
# One grid step == NB batch elements flattened along lanes.
# Outputs: concat activations (Cout, NB*L) and partial BN stats (1, Cout, 2).
# ----------------------------------------------------------------------------
def _make_branch_kernel(kss, Cf, L, NB):
    n_k = len(kss)
    ks_max = max(kss)
    pmax = (ks_max - 1) // 2
    NBL = NB * L
    Cf_tot = n_k * Cf

    def kernel(x_ref, wb_ref, wf_ref, wp_ref, y_ref, st_ref, pad_ref, pool_ref):
        x = x_ref[...]                                            # (Ci, NBL)

        # position of each lane inside its length-L sample (for per-sample
        # "same" padding after flattening NB samples onto the lane axis)
        pos = lax.broadcasted_iota(jnp.int32, (1, NBL), 1) % L

        # ---- bottleneck 1x1 conv: (Cb, Ci) @ (Ci, NBL) ----
        bottled = jnp.dot(wb_ref[...], x, preferred_element_type=jnp.float32)

        # Stash in a padded scratch so taps are offset reads.  No init needed:
        # masked (valid) lanes never read the 2*pmax border columns.
        pad_ref[:, pmax:pmax + NBL] = bottled

        # ---- fused conv branches: one (Cf_tot, Cb) matmul per tap ----
        acc = jnp.dot(wf_ref[pmax], bottled, preferred_element_type=jnp.float32)
        for t in range(ks_max):
            d = t - pmax
            if d == 0:
                continue
            valid = (pos + d >= 0) & (pos + d < L)
            shifted = jnp.where(valid, pad_ref[:, pmax + d:pmax + d + NBL], 0.0)
            acc = acc + jnp.dot(wf_ref[t], shifted,
                                preferred_element_type=jnp.float32)

        # ---- MaxPool1d(3, stride=1, padding=1) + 1x1 conv branch ----
        pool_ref[:, 1:1 + NBL] = x
        neg = jnp.float32(-jnp.inf)
        left = jnp.where(pos >= 1, pool_ref[:, 0:NBL], neg)        # x[j-1]
        right = jnp.where(pos <= L - 2, pool_ref[:, 2:2 + NBL], neg)  # x[j+1]
        pooled = jnp.maximum(jnp.maximum(left, x), right)
        pool_out = jnp.dot(wp_ref[...], pooled,
                           preferred_element_type=jnp.float32)

        # ---- concatenated output, channels-major / lane-dense ----
        y_ref[0:Cf_tot, :] = acc.astype(y_ref.dtype)
        y_ref[Cf_tot:, :] = pool_out.astype(y_ref.dtype)

        # ---- partial BatchNorm statistics (sum, sum of squares) ----
        y = y_ref[...].astype(jnp.float32)
        st_ref[0, :, 0:1] = jnp.sum(y, axis=1, keepdims=True)
        st_ref[0, :, 1:2] = jnp.sum(y * y, axis=1, keepdims=True)

    return kernel


# ----------------------------------------------------------------------------
# Kernel B: streaming normalize (precomputed per-channel scale/shift) + ReLU.
# ----------------------------------------------------------------------------
def _norm_relu_kernel(y_ref, scale_ref, shift_ref, o_ref):
    y = y_ref[...].astype(jnp.float32)
    out = y * scale_ref[...] + shift_ref[...]
    o_ref[...] = jnp.maximum(out, 0.0).astype(o_ref.dtype)


# ----------------------------------------------------------------------------
# Wrapper
# ----------------------------------------------------------------------------
def inception_block_1d(x, params, kss, *, eps=1e-5, target_lanes=512):
    N, Ci, L = x.shape
    assert all(ks % 2 == 1 for ks in kss), "kernel sizes must be odd"
    wb = params["wb"]                  # (Cb, Ci)
    wcs = params["wcs"]                # list of (ks, Cf, Cb)
    wp = params["wp"]                  # (Cf, Ci)
    gamma = params["gamma"]            # (Cout, 1)
    beta = params["beta"]              # (Cout, 1)

    Cb = wb.shape[0]
    Cf = wp.shape[0]
    n_k = len(kss)
    Cout = (n_k + 1) * Cf
    ks_max = max(kss)
    pmax = (ks_max - 1) // 2

    # ---- fuse conv-branch weights into one centered, zero-padded stack ----
    wf = jnp.zeros((ks_max, n_k * Cf, Cb), jnp.float32)
    for bi, (ks, wc) in enumerate(zip(kss, wcs)):
        off = (ks_max - ks) // 2
        wf = wf.at[off:off + ks, bi * Cf:(bi + 1) * Cf, :].set(
            wc.astype(jnp.float32))

    # ---- batch blocking so the matmul RHS / store lane extent is wide ----
    NB = _pick_batch_block(N, L, target_lanes)
    nb_blocks = N // NB
    NBL = NB * L

    # channels-major, (batch*length)-on-lanes layout (XLA layout plumbing)
    x2 = jnp.transpose(x, (1, 0, 2)).reshape(Ci, N * L).astype(jnp.float32)

    branch_kernel = _make_branch_kernel(kss, Cf, L, NB)

    concat, stats = pl.pallas_call(
        branch_kernel,
        out_shape=(
            jax.ShapeDtypeStruct((Cout, N * L), jnp.float32),
            jax.ShapeDtypeStruct((nb_blocks, Cout, 2), jnp.float32),
        ),
        grid=(nb_blocks,),
        in_specs=[
            pl.BlockSpec((Ci, NBL), lambda n: (0, n)),
            pl.BlockSpec((Cb, Ci), lambda n: (0, 0)),
            pl.BlockSpec((ks_max, n_k * Cf, Cb), lambda n: (0, 0, 0)),
            pl.BlockSpec((Cf, Ci), lambda n: (0, 0)),
        ],
        out_specs=(
            pl.BlockSpec((Cout, NBL), lambda n: (0, n)),
            pl.BlockSpec((1, Cout, 2), lambda n: (n, 0, 0)),
        ),
        scratch_shapes=[
            pltpu.VMEM((Cb, NBL + 2 * pmax), jnp.float32),
            pltpu.VMEM((Ci, NBL + 2), jnp.float32),
        ],
        compiler_params=pltpu.CompilerParams(
            dimension_semantics=("parallel",)),
    )(x2, wb.astype(jnp.float32), wf, wp.astype(jnp.float32))

    # ---- finish BatchNorm statistics (tiny) in plain JAX ----
    count = float(N * L)
    ssum = jnp.sum(stats[:, :, 0], axis=0)                    # (Cout,)
    ssq = jnp.sum(stats[:, :, 1], axis=0)                     # (Cout,)
    mean = ssum / count
    var = jnp.maximum(ssq / count - mean * mean, 0.0)         # biased variance
    inv = lax.rsqrt(var + eps)
    g = gamma.reshape(Cout)
    b = beta.reshape(Cout)
    scale = (g * inv).reshape(Cout, 1).astype(jnp.float32)
    shift = (b - mean * g * inv).reshape(Cout, 1).astype(jnp.float32)

    # ---- pass 2: streaming normalize + ReLU ----
    out2 = pl.pallas_call(
        _norm_relu_kernel,
        out_shape=jax.ShapeDtypeStruct((Cout, N * L), jnp.float32),
        grid=(nb_blocks,),
        in_specs=[
            pl.BlockSpec((Cout, NBL), lambda n: (0, n)),
            pl.BlockSpec((Cout, 1), lambda n: (0, 0)),
            pl.BlockSpec((Cout, 1), lambda n: (0, 0)),
        ],
        out_specs=pl.BlockSpec((Cout, NBL), lambda n: (0, n)),
        compiler_params=pltpu.CompilerParams(
            dimension_semantics=("parallel",)),
    )(concat, scale, shift)

    # back to PyTorch's (N, C, L) layout
    return jnp.transpose(out2.reshape(Cout, N, L), (1, 0, 2))


# ----------------------------------------------------------------------------
# Pure-JAX reference (for correctness check only)
# ----------------------------------------------------------------------------
def _reference(x, params, kss, eps=1e-5):
    N, Ci, L = x.shape
    wb, wcs, wp = params["wb"], params["wcs"], params["wp"]
    gamma = params["gamma"][:, 0]
    beta = params["beta"][:, 0]

    bottled = jnp.einsum("oi,nil->nol", wb, x)
    outs = []
    for ks, wc in zip(kss, wcs):
        p = (ks - 1) // 2
        w = jnp.transpose(wc, (1, 2, 0))  # (Cf, Cb, ks) == OIH
        outs.append(
            lax.conv_general_dilated(
                bottled, w, window_strides=(1,), padding=[(p, p)],
                dimension_numbers=("NCH", "OIH", "NCH"),
            )
        )
    xp = jnp.pad(x, ((0, 0), (0, 0), (1, 1)), constant_values=-jnp.inf)
    pooled = jnp.maximum(jnp.maximum(xp[:, :, 0:L], xp[:, :, 1:1 + L]),
                         xp[:, :, 2:2 + L])
    outs.append(jnp.einsum("oi,nil->nol", wp, pooled))
    cat = jnp.concatenate(outs, axis=1)

    mean = jnp.mean(cat, axis=(0, 2), keepdims=True)
    var = jnp.mean((cat - mean) ** 2, axis=(0, 2), keepdims=True)
    y = (cat - mean) / jnp.sqrt(var + eps)
    y = y * gamma[None, :, None] + beta[None, :, None]
    return jnp.maximum(y, 0.0)


if __name__ == "__main__":
    key = jax.random.PRNGKey(0)

    # small shapes consistent with the module
    N, ni, L = 2, 6, 32
    bottleneck_size = 8
    nb_filters = 8
    kss = [7, 5, 3]
    Cout = (len(kss) + 1) * nb_filters

    keys = jax.random.split(key, 3 + len(kss))
    wb = jax.random.normal(keys[0], (bottleneck_size, ni), jnp.float32) * 0.3
    wcs = [
        jax.random.normal(keys[1 + i], (ks, nb_filters, bottleneck_size),
                          jnp.float32) * 0.2
        for i, ks in enumerate(kss)
    ]
    wp = jax.random.normal(keys[1 + len(kss)], (nb_filters, ni), jnp.float32) * 0.3
    x = jax.random.normal(keys[2 + len(kss)], (N, ni, L), jnp.float32)

    # BatchNorm1d default init: gamma = 1, beta = 0
    gamma = jnp.ones((Cout, 1), jnp.float32)
    beta = jnp.zeros((Cout, 1), jnp.float32)

    params = dict(wb=wb, wcs=wcs, wp=wp, gamma=gamma, beta=beta)

    out = inception_block_1d(x, params, kss)
    out = jax.block_until_ready(out)

    ref = _reference(x, params, kss)
    assert out.shape == (N, Cout, L), out.shape
    if not jnp.allclose(out, ref, atol=1e-3, rtol=1e-3):
        raise AssertionError("Pallas InceptionBlock1d does not match reference")

    print("KERNEL_OK")
</pallas_src>

<mosaic_0001>
module attributes {stable_mosaic.version = 11 : i64} {
  func.func @kernel(%arg0: i32, %arg1: memref<6x64xf32, #tpu.memory_space<vmem>>, %arg2: memref<8x6xf32, #tpu.memory_space<vmem>>, %arg3: memref<7x24x8xf32, #tpu.memory_space<vmem>>, %arg4: memref<8x6xf32, #tpu.memory_space<vmem>>, %arg5: memref<32x64xf32, #tpu.memory_space<vmem>>, %arg6: memref<1x32x2xf32, #tpu.memory_space<vmem>>, %arg7: memref<8x70xf32, #tpu.memory_space<vmem>>, %arg8: memref<6x66xf32, #tpu.memory_space<vmem>>) attributes {dimension_semantics = [#tpu.dimension_semantics<parallel>], iteration_bounds = array<i64: 1>, scalar_prefetch = 0 : i64, scratch_operands = 2 : i64, tpu.core_type = #tpu.core_type<tc>, window_params = [{transform_indices = @transform_0, window_bounds = array<i64: 6, 64>}, {pipeline_mode = #tpu.pipeline_mode<synchronous>, transform_indices = @transform_1, window_bounds = array<i64: 8, 6>}, {pipeline_mode = #tpu.pipeline_mode<synchronous>, transform_indices = @transform_2, window_bounds = array<i64: 7, 24, 8>}, {pipeline_mode = #tpu.pipeline_mode<synchronous>, transform_indices = @transform_3, window_bounds = array<i64: 8, 6>}, {transform_indices = @transform_4, window_bounds = array<i64: 32, 64>}, {transform_indices = @transform_5, window_bounds = array<i64: 1, 32, 2>}]} {
    %c0 = arith.constant 0 : index
    %c0_0 = arith.constant 0 : index
    %0 = vector.load %arg1[%c0, %c0_0] : memref<6x64xf32, #tpu.memory_space<vmem>>, vector<6x64xf32>
    %1 = tpu.iota {dimensions = array<i32: 1>} : vector<1x64xi32>
    %c32_i32 = arith.constant 32 : i32
    %c0_i32 = arith.constant 0 : i32
    %2 = arith.cmpi eq, %c32_i32, %c0_i32 : i32
    %c1_i32 = arith.constant 1 : i32
    %3 = arith.select %2, %c1_i32, %c32_i32 : i32
    %4 = vector.broadcast %3 : i32 to vector<1x64xi32>
    %5 = arith.remsi %1, %4 : vector<1x64xi32>
    %c0_i32_1 = arith.constant 0 : i32
    %6 = vector.broadcast %c0_i32_1 : i32 to vector<1x64xi32>
    %7 = arith.cmpi ne, %5, %6 : vector<1x64xi32>
    %c0_i32_2 = arith.constant 0 : i32
    %8 = vector.broadcast %c0_i32_2 : i32 to vector<1x64xi32>
    %9 = arith.cmpi slt, %5, %8 : vector<1x64xi32>
    %c0_i32_3 = arith.constant 0 : i32
    %10 = arith.cmpi slt, %3, %c0_i32_3 : i32
    %11 = vector.broadcast %10 : i1 to vector<1x64xi1>
    %12 = vector.broadcast %11 : vector<1x64xi1> to vector<1x64xi1>
    %13 = arith.xori %9, %12 : vector<1x64xi1>
    %14 = arith.andi %13, %7 : vector<1x64xi1>
    %15 = vector.broadcast %3 : i32 to vector<1x64xi32>
    %16 = arith.addi %5, %15 : vector<1x64xi32>
    %17 = arith.select %14, %16, %5 : vector<1x64xi1>, vector<1x64xi32>
    %c0_4 = arith.constant 0 : index
    %c0_5 = arith.constant 0 : index
    %18 = vector.load %arg2[%c0_4, %c0_5] : memref<8x6xf32, #tpu.memory_space<vmem>>, vector<8x6xf32>
    %cst = arith.constant dense<0.000000e+00> : vector<8x64xf32>
    %19 = tpu.matmul %18, %0, %cst {dimension_numbers = #tpu.dot_dimension_numbers<[1], [0], [0], [1], [0, 0, 1, 1], [], []>} : vector<8x6xf32>, vector<6x64xf32>, vector<8x64xf32> -> vector<8x64xf32>
    %c0_6 = arith.constant 0 : index
    %c3 = arith.constant 3 : index
    %20 = vector.load %arg7[%c0_6, %c3] : memref<8x70xf32, #tpu.memory_space<vmem>>, vector<8x64xf32>
    tpu.vector_store %arg7[%c0_6, %c3], %19 {strides = array<i32>} : memref<8x70xf32, #tpu.memory_space<vmem>>, vector<8x64xf32>,
    %c3_7 = arith.constant 3 : index
    %c0_8 = arith.constant 0 : index
    %c0_9 = arith.constant 0 : index
    %21 = vector.load %arg3[%c3_7, %c0_8, %c0_9] : memref<7x24x8xf32, #tpu.memory_space<vmem>>, vector<1x24x8xf32>
    %22 = vector.shape_cast %21 : vector<1x24x8xf32> to vector<24x8xf32>
    %cst_10 = arith.constant dense<0.000000e+00> : vector<24x64xf32>
    %23 = tpu.matmul %22, %19, %cst_10 {dimension_numbers = #tpu.dot_dimension_numbers<[1], [0], [0], [1], [0, 0, 1, 1], [], []>} : vector<24x8xf32>, vector<8x64xf32>, vector<24x64xf32> -> vector<24x64xf32>
    %c-3_i32 = arith.constant -3 : i32
    %24 = vector.broadcast %c-3_i32 : i32 to vector<1x64xi32>
    %25 = arith.addi %17, %24 : vector<1x64xi32>
    %c0_i32_11 = arith.constant 0 : i32
    %26 = vector.broadcast %c0_i32_11 : i32 to vector<1x64xi32>
    %27 = arith.cmpi sge, %25, %26 : vector<1x64xi32>
    %c-3_i32_12 = arith.constant -3 : i32
    %28 = vector.broadcast %c-3_i32_12 : i32 to vector<1x64xi32>
    %29 = arith.addi %17, %28 : vector<1x64xi32>
    %c32_i32_13 = arith.constant 32 : i32
    %30 = vector.broadcast %c32_i32_13 : i32 to vector<1x64xi32>
    %31 = arith.cmpi slt, %29, %30 : vector<1x64xi32>
    %32 = arith.andi %27, %31 : vector<1x64xi1>
    %c0_14 = arith.constant 0 : index
    %c0_15 = arith.constant 0 : index
    %33 = vector.load %arg7[%c0_14, %c0_15] : memref<8x70xf32, #tpu.memory_space<vmem>>, vector<8x64xf32>
    %cst_16 = arith.constant 0.000000e+00 : f32
    %34 = vector.shape_cast %32 : vector<1x64xi1> to vector<1x64xi1>
    %35 = vector.broadcast %34 : vector<1x64xi1> to vector<8x64xi1>
    %36 = vector.broadcast %cst_16 : f32 to vector<8x64xf32>
    %37 = arith.select %35, %33, %36 : vector<8x64xi1>, vector<8x64xf32>
    %c0_17 = arith.constant 0 : index
    %c0_18 = arith.constant 0 : index
    %c0_19 = arith.constant 0 : index
    %38 = vector.load %arg3[%c0_17, %c0_18, %c0_19] : memref<7x24x8xf32, #tpu.memory_space<vmem>>, vector<1x24x8xf32>
    %39 = vector.shape_cast %38 : vector<1x24x8xf32> to vector<24x8xf32>
    %cst_20 = arith.constant dense<0.000000e+00> : vector<24x64xf32>
    %40 = tpu.matmul %39, %37, %cst_20 {dimension_numbers = #tpu.dot_dimension_numbers<[1], [0], [0], [1], [0, 0, 1, 1], [], []>} : vector<24x8xf32>, vector<8x64xf32>, vector<24x64xf32> -> vector<24x64xf32>
    %41 = arith.addf %23, %40 : vector<24x64xf32>
    %c-2_i32 = arith.constant -2 : i32
    %42 = vector.broadcast %c-2_i32 : i32 to vector<1x64xi32>
    %43 = arith.addi %17, %42 : vector<1x64xi32>
    %c0_i32_21 = arith.constant 0 : i32
    %44 = vector.broadcast %c0_i32_21 : i32 to vector<1x64xi32>
    %45 = arith.cmpi sge, %43, %44 : vector<1x64xi32>
    %c-2_i32_22 = arith.constant -2 : i32
    %46 = vector.broadcast %c-2_i32_22 : i32 to vector<1x64xi32>
    %47 = arith.addi %17, %46 : vector<1x64xi32>
    %c32_i32_23 = arith.constant 32 : i32
    %48 = vector.broadcast %c32_i32_23 : i32 to vector<1x64xi32>
    %49 = arith.cmpi slt, %47, %48 : vector<1x64xi32>
    %50 = arith.andi %45, %49 : vector<1x64xi1>
    %c0_24 = arith.constant 0 : index
    %c1 = arith.constant 1 : index
    %51 = vector.load %arg7[%c0_24, %c1] : memref<8x70xf32, #tpu.memory_space<vmem>>, vector<8x64xf32>
    %cst_25 = arith.constant 0.000000e+00 : f32
    %52 = vector.shape_cast %50 : vector<1x64xi1> to vector<1x64xi1>
    %53 = vector.broadcast %52 : vector<1x64xi1> to vector<8x64xi1>
    %54 = vector.broadcast %cst_25 : f32 to vector<8x64xf32>
    %55 = arith.select %53, %51, %54 : vector<8x64xi1>, vector<8x64xf32>
    %c1_26 = arith.constant 1 : index
    %c0_27 = arith.constant 0 : index
    %c0_28 = arith.constant 0 : index
    %56 = vector.load %arg3[%c1_26, %c0_27, %c0_28] : memref<7x24x8xf32, #tpu.memory_space<vmem>>, vector<1x24x8xf32>
    %57 = vector.shape_cast %56 : vector<1x24x8xf32> to vector<24x8xf32>
    %cst_29 = arith.constant dense<0.000000e+00> : vector<24x64xf32>
    %58 = tpu.matmul %57, %55, %cst_29 {dimension_numbers = #tpu.dot_dimension_numbers<[1], [0], [0], [1], [0, 0, 1, 1], [], []>} : vector<24x8xf32>, vector<8x64xf32>, vector<24x64xf32> -> vector<24x64xf32>
    %59 = arith.addf %41, %58 : vector<24x64xf32>
    %c-1_i32 = arith.constant -1 : i32
    %60 = vector.broadcast %c-1_i32 : i32 to vector<1x64xi32>
    %61 = arith.addi %17, %60 : vector<1x64xi32>
    %c0_i32_30 = arith.constant 0 : i32
    %62 = vector.broadcast %c0_i32_30 : i32 to vector<1x64xi32>
    %63 = arith.cmpi sge, %61, %62 : vector<1x64xi32>
    %c-1_i32_31 = arith.constant -1 : i32
    %64 = vector.broadcast %c-1_i32_31 : i32 to vector<1x64xi32>
    %65 = arith.addi %17, %64 : vector<1x64xi32>
    %c32_i32_32 = arith.constant 32 : i32
    %66 = vector.broadcast %c32_i32_32 : i32 to vector<1x64xi32>
    %67 = arith.cmpi slt, %65, %66 : vector<1x64xi32>
    %68 = arith.andi %63, %67 : vector<1x64xi1>
    %c0_33 = arith.constant 0 : index
    %c2 = arith.constant 2 : index
    %69 = vector.load %arg7[%c0_33, %c2] : memref<8x70xf32, #tpu.memory_space<vmem>>, vector<8x64xf32>
    %cst_34 = arith.constant 0.000000e+00 : f32
    %70 = vector.shape_cast %68 : vector<1x64xi1> to vector<1x64xi1>
    %71 = vector.broadcast %70 : vector<1x64xi1> to vector<8x64xi1>
    %72 = vector.broadcast %cst_34 : f32 to vector<8x64xf32>
    %73 = arith.select %71, %69, %72 : vector<8x64xi1>, vector<8x64xf32>
    %c2_35 = arith.constant 2 : index
    %c0_36 = arith.constant 0 : index
    %c0_37 = arith.constant 0 : index
    %74 = vector.load %arg3[%c2_35, %c0_36, %c0_37] : memref<7x24x8xf32, #tpu.memory_space<vmem>>, vector<1x24x8xf32>
    %75 = vector.shape_cast %74 : vector<1x24x8xf32> to vector<24x8xf32>
    %cst_38 = arith.constant dense<0.000000e+00> : vector<24x64xf32>
    %76 = tpu.matmul %75, %73, %cst_38 {dimension_numbers = #tpu.dot_dimension_numbers<[1], [0], [0], [1], [0, 0, 1, 1], [], []>} : vector<24x8xf32>, vector<8x64xf32>, vector<24x64xf32> -> vector<24x64xf32>
    %77 = arith.addf %59, %76 : vector<24x64xf32>
    %c1_i32_39 = arith.constant 1 : i32
    %78 = vector.broadcast %c1_i32_39 : i32 to vector<1x64xi32>
    %79 = arith.addi %17, %78 : vector<1x64xi32>
    %c0_i32_40 = arith.constant 0 : i32
    %80 = vector.broadcast %c0_i32_40 : i32 to vector<1x64xi32>
    %81 = arith.cmpi sge, %79, %80 : vector<1x64xi32>
    %c1_i32_41 = arith.constant 1 : i32
    %82 = vector.broadcast %c1_i32_41 : i32 to vector<1x64xi32>
    %83 = arith.addi %17, %82 : vector<1x64xi32>
    %c32_i32_42 = arith.constant 32 : i32
    %84 = vector.broadcast %c32_i32_42 : i32 to vector<1x64xi32>
    %85 = arith.cmpi slt, %83, %84 : vector<1x64xi32>
    %86 = arith.andi %81, %85 : vector<1x64xi1>
    %c0_43 = arith.constant 0 : index
    %c4 = arith.constant 4 : index
    %87 = vector.load %arg7[%c0_43, %c4] : memref<8x70xf32, #tpu.memory_space<vmem>>, vector<8x64xf32>
    %cst_44 = arith.constant 0.000000e+00 : f32
    %88 = vector.shape_cast %86 : vector<1x64xi1> to vector<1x64xi1>
    %89 = vector.broadcast %88 : vector<1x64xi1> to vector<8x64xi1>
    %90 = vector.broadcast %cst_44 : f32 to vector<8x64xf32>
    %91 = arith.select %89, %87, %90 : vector<8x64xi1>, vector<8x64xf32>
    %c4_45 = arith.constant 4 : index
    %c0_46 = arith.constant 0 : index
    %c0_47 = arith.constant 0 : index
    %92 = vector.load %arg3[%c4_45, %c0_46, %c0_47] : memref<7x24x8xf32, #tpu.memory_space<vmem>>, vector<1x24x8xf32>
    %93 = vector.shape_cast %92 : vector<1x24x8xf32> to vector<24x8xf32>
    %cst_48 = arith.constant dense<0.000000e+00> : vector<24x64xf32>
    %94 = tpu.matmul %93, %91, %cst_48 {dimension_numbers = #tpu.dot_dimension_numbers<[1], [0], [0], [1], [0, 0, 1, 1], [], []>} : vector<24x8xf32>, vector<8x64xf32>, vector<24x64xf32> -> vector<24x64xf32>
    %95 = arith.addf %77, %94 : vector<24x64xf32>
    %c2_i32 = arith.constant 2 : i32
    %96 = vector.broadcast %c2_i32 : i32 to vector<1x64xi32>
    %97 = arith.addi %17, %96 : vector<1x64xi32>
    %c0_i32_49 = arith.constant 0 : i32
    %98 = vector.broadcast %c0_i32_49 : i32 to vector<1x64xi32>
    %99 = arith.cmpi sge, %97, %98 : vector<1x64xi32>
    %c2_i32_50 = arith.constant 2 : i32
    %100 = vector.broadcast %c2_i32_50 : i32 to vector<1x64xi32>
    %101 = arith.addi %17, %100 : vector<1x64xi32>
    %c32_i32_51 = arith.constant 32 : i32
    %102 = vector.broadcast %c32_i32_51 : i32 to vector<1x64xi32>
    %103 = arith.cmpi slt, %101, %102 : vector<1x64xi32>
    %104 = arith.andi %99, %103 : vector<1x64xi1>
    %c0_52 = arith.constant 0 : index
    %c5 = arith.constant 5 : index
    %105 = vector.load %arg7[%c0_52, %c5] : memref<8x70xf32, #tpu.memory_space<vmem>>, vector<8x64xf32>
    %cst_53 = arith.constant 0.000000e+00 : f32
    %106 = vector.shape_cast %104 : vector<1x64xi1> to vector<1x64xi1>
    %107 = vector.broadcast %106 : vector<1x64xi1> to vector<8x64xi1>
    %108 = vector.broadcast %cst_53 : f32 to vector<8x64xf32>
    %109 = arith.select %107, %105, %108 : vector<8x64xi1>, vector<8x64xf32>
    %c5_54 = arith.constant 5 : index
    %c0_55 = arith.constant 0 : index
    %c0_56 = arith.constant 0 : index
    %110 = vector.load %arg3[%c5_54, %c0_55, %c0_56] : memref<7x24x8xf32, #tpu.memory_space<vmem>>, vector<1x24x8xf32>
    %111 = vector.shape_cast %110 : vector<1x24x8xf32> to vector<24x8xf32>
    %cst_57 = arith.constant dense<0.000000e+00> : vector<24x64xf32>
    %112 = tpu.matmul %111, %109, %cst_57 {dimension_numbers = #tpu.dot_dimension_numbers<[1], [0], [0], [1], [0, 0, 1, 1], [], []>} : vector<24x8xf32>, vector<8x64xf32>, vector<24x64xf32> -> vector<24x64xf32>
    %113 = arith.addf %95, %112 : vector<24x64xf32>
    %c3_i32 = arith.constant 3 : i32
    %114 = vector.broadcast %c3_i32 : i32 to vector<1x64xi32>
    %115 = arith.addi %17, %114 : vector<1x64xi32>
    %c0_i32_58 = arith.constant 0 : i32
    %116 = vector.broadcast %c0_i32_58 : i32 to vector<1x64xi32>
    %117 = arith.cmpi sge, %115, %116 : vector<1x64xi32>
    %c3_i32_59 = arith.constant 3 : i32
    %118 = vector.broadcast %c3_i32_59 : i32 to vector<1x64xi32>
    %119 = arith.addi %17, %118 : vector<1x64xi32>
    %c32_i32_60 = arith.constant 32 : i32
    %120 = vector.broadcast %c32_i32_60 : i32 to vector<1x64xi32>
    %121 = arith.cmpi slt, %119, %120 : vector<1x64xi32>
    %122 = arith.andi %117, %121 : vector<1x64xi1>
    %c0_61 = arith.constant 0 : index
    %c6 = arith.constant 6 : index
    %123 = vector.load %arg7[%c0_61, %c6] : memref<8x70xf32, #tpu.memory_space<vmem>>, vector<8x64xf32>
    %cst_62 = arith.constant 0.000000e+00 : f32
    %124 = vector.shape_cast %122 : vector<1x64xi1> to vector<1x64xi1>
    %125 = vector.broadcast %124 : vector<1x64xi1> to vector<8x64xi1>
    %126 = vector.broadcast %cst_62 : f32 to vector<8x64xf32>
    %127 = arith.select %125, %123, %126 : vector<8x64xi1>, vector<8x64xf32>
    %c6_63 = arith.constant 6 : index
    %c0_64 = arith.constant 0 : index
    %c0_65 = arith.constant 0 : index
    %128 = vector.load %arg3[%c6_63, %c0_64, %c0_65] : memref<7x24x8xf32, #tpu.memory_space<vmem>>, vector<1x24x8xf32>
    %129 = vector.shape_cast %128 : vector<1x24x8xf32> to vector<24x8xf32>
    %cst_66 = arith.constant dense<0.000000e+00> : vector<24x64xf32>
    %130 = tpu.matmul %129, %127, %cst_66 {dimension_numbers = #tpu.dot_dimension_numbers<[1], [0], [0], [1], [0, 0, 1, 1], [], []>} : vector<24x8xf32>, vector<8x64xf32>, vector<24x64xf32> -> vector<24x64xf32>
    %131 = arith.addf %113, %130 : vector<24x64xf32>
    %c0_67 = arith.constant 0 : index
    %c1_68 = arith.constant 1 : index
    %132 = vector.load %arg8[%c0_67, %c1_68] : memref<6x66xf32, #tpu.memory_space<vmem>>, vector<6x64xf32>
    tpu.vector_store %arg8[%c0_67, %c1_68], %0 {strides = array<i32>} : memref<6x66xf32, #tpu.memory_space<vmem>>, vector<6x64xf32>,
    %c1_i32_69 = arith.constant 1 : i32
    %133 = vector.broadcast %c1_i32_69 : i32 to vector<1x64xi32>
    %134 = arith.cmpi sge, %17, %133 : vector<1x64xi32>
    %c0_70 = arith.constant 0 : index
    %c0_71 = arith.constant 0 : index
    %135 = vector.load %arg8[%c0_70, %c0_71] : memref<6x66xf32, #tpu.memory_space<vmem>>, vector<6x64xf32>
    %cst_72 = arith.constant 0xFF800000 : f32
    %136 = vector.shape_cast %134 : vector<1x64xi1> to vector<1x64xi1>
    %137 = vector.broadcast %136 : vector<1x64xi1> to vector<6x64xi1>
    %138 = vector.broadcast %cst_72 : f32 to vector<6x64xf32>
    %139 = arith.select %137, %135, %138 : vector<6x64xi1>, vector<6x64xf32>
    %c30_i32 = arith.constant 30 : i32
    %140 = vector.broadcast %c30_i32 : i32 to vector<1x64xi32>
    %141 = arith.cmpi sle, %17, %140 : vector<1x64xi32>
    %c0_73 = arith.constant 0 : index
    %c2_74 = arith.constant 2 : index
    %142 = vector.load %arg8[%c0_73, %c2_74] : memref<6x66xf32, #tpu.memory_space<vmem>>, vector<6x64xf32>
    %cst_75 = arith.constant 0xFF800000 : f32
    %143 = vector.shape_cast %141 : vector<1x64xi1> to vector<1x64xi1>
    %144 = vector.broadcast %143 : vector<1x64xi1> to vector<6x64xi1>
    %145 = vector.broadcast %cst_75 : f32 to vector<6x64xf32>
    %146 = arith.select %144, %142, %145 : vector<6x64xi1>, vector<6x64xf32>
    %147 = arith.maximumf %139, %0 : vector<6x64xf32>
    %148 = arith.maximumf %147, %146 : vector<6x64xf32>
    %c0_76 = arith.constant 0 : index
    %c0_77 = arith.constant 0 : index
    %149 = vector.load %arg4[%c0_76, %c0_77] : memref<8x6xf32, #tpu.memory_space<vmem>>, vector<8x6xf32>
    %cst_78 = arith.constant dense<0.000000e+00> : vector<8x64xf32>
    %150 = tpu.matmul %149, %148, %cst_78 {dimension_numbers = #tpu.dot_dimension_numbers<[1], [0], [0], [1], [0, 0, 1, 1], [], []>} : vector<8x6xf32>, vector<6x64xf32>, vector<8x64xf32> -> vector<8x64xf32>
    %c0_79 = arith.constant 0 : index
    %c0_80 = arith.constant 0 : index
    %151 = vector.load %arg5[%c0_79, %c0_80] : memref<32x64xf32, #tpu.memory_space<vmem>>, vector<24x64xf32>
    tpu.vector_store %arg5[%c0_79, %c0_80], %131 {strides = array<i32>} : memref<32x64xf32, #tpu.memory_space<vmem>>, vector<24x64xf32>,
    %c24 = arith.constant 24 : index
    %c0_81 = arith.constant 0 : index
    %152 = vector.load %arg5[%c24, %c0_81] : memref<32x64xf32, #tpu.memory_space<vmem>>, vector<8x64xf32>
    tpu.vector_store %arg5[%c24, %c0_81], %150 {strides = array<i32>} : memref<32x64xf32, #tpu.memory_space<vmem>>, vector<8x64xf32>,
    %c0_82 = arith.constant 0 : index
    %c0_83 = arith.constant 0 : index
    %153 = vector.load %arg5[%c0_82, %c0_83] : memref<32x64xf32, #tpu.memory_space<vmem>>, vector<32x64xf32>
    %cst_84 = arith.constant dense<0.000000e+00> : vector<32xf32>
    %154 = vector.multi_reduction <add>, %153, %cst_84 [1] : vector<32x64xf32> to vector<32xf32>
    %155 = vector.shape_cast %154 : vector<32xf32> to vector<32x1xf32>
    %c0_85 = arith.constant 0 : index
    %c0_86 = arith.constant 0 : index
    %c0_87 = arith.constant 0 : index
    %156 = vector.load %arg6[%c0_85, %c0_86, %c0_87] : memref<1x32x2xf32, #tpu.memory_space<vmem>>, vector<1x32x1xf32>
    %157 = vector.shape_cast %156 : vector<1x32x1xf32> to vector<32x1xf32>
    %158 = vector.shape_cast %155 : vector<32x1xf32> to vector<1x32x1xf32>
    tpu.vector_store %arg6[%c0_85, %c0_86, %c0_87], %158 {strides = array<i32>} : memref<1x32x2xf32, #tpu.memory_space<vmem>>, vector<1x32x1xf32>,
    %159 = arith.mulf %153, %153 : vector<32x64xf32>
    %cst_88 = arith.constant dense<0.000000e+00> : vector<32xf32>
    %160 = vector.multi_reduction <add>, %159, %cst_88 [1] : vector<32x64xf32> to vector<32xf32>
    %161 = vector.shape_cast %160 : vector<32xf32> to vector<32x1xf32>
    %c0_89 = arith.constant 0 : index
    %c0_90 = arith.constant 0 : index
    %c1_91 = arith.constant 1 : index
    %162 = vector.load %arg6[%c0_89, %c0_90, %c1_91] : memref<1x32x2xf32, #tpu.memory_space<vmem>>, vector<1x32x1xf32>
    %163 = vector.shape_cast %162 : vector<1x32x1xf32> to vector<32x1xf32>
    %164 = vector.shape_cast %161 : vector<32x1xf32> to vector<1x32x1xf32>
    tpu.vector_store %arg6[%c0_89, %c0_90, %c1_91], %164 {strides = array<i32>} : memref<1x32x2xf32, #tpu.memory_space<vmem>>, vector<1x32x1xf32>,
    return
  }
  func.func @transform_0(%arg0: i32) -> (i32, i32) {
    %c0_i32 = arith.constant 0 : i32
    %c0_i32_0 = arith.constant 0 : i32
    return %c0_i32, %arg0 : i32, i32
  }
  func.func @transform_1(%arg0: i32) -> (i32, i32) {
    %c0_i32 = arith.constant 0 : i32
    %c0_i32_0 = arith.constant 0 : i32
    %c0_i32_1 = arith.constant 0 : i32
    return %c0_i32, %c0_i32_0 : i32, i32
  }
  func.func @transform_2(%arg0: i32) -> (i32, i32, i32) {
    %c0_i32 = arith.constant 0 : i32
    %c0_i32_0 = arith.constant 0 : i32
    %c0_i32_1 = arith.constant 0 : i32
    %c0_i32_2 = arith.constant 0 : i32
    return %c0_i32, %c0_i32_0, %c0_i32_1 : i32, i32, i32
  }
  func.func @transform_3(%arg0: i32) -> (i32, i32) {
    %c0_i32 = arith.constant 0 : i32
    %c0_i32_0 = arith.constant 0 : i32
    %c0_i32_1 = arith.constant 0 : i32
    return %c0_i32, %c0_i32_0 : i32, i32
  }
  func.func @transform_4(%arg0: i32) -> (i32, i32) {
    %c0_i32 = arith.constant 0 : i32
    %c0_i32_0 = arith.constant 0 : i32
    return %c0_i32, %arg0 : i32, i32
  }
  func.func @transform_5(%arg0: i32) -> (i32, i32, i32) {
    %c0_i32 = arith.constant 0 : i32
    %c0_i32_0 = arith.constant 0 : i32
    %c0_i32_1 = arith.constant 0 : i32
    return %arg0, %c0_i32, %c0_i32_0 : i32, i32, i32
  }
}

</mosaic_0001>

<bundles_post_ra>
// kernel: tpu_custom_call.1
= control target key start
LH: loop header
LB: loop body
LE: loop exit
PB: predicated region body
PF: predicated region fallthrough
CT: control target
= control target key end

     0   :  { %vm40_vm0 = vcmask 1045504   ;;  %v1211_v2 = vmov 0.0   ;;  %vm1212_vm1 = vmmov 0   ;;  %vm36_vm2 = vcmask 48128   ;;  %s1465_s0 = inlined_call_operand.vmem [shape: f32[6,64], index: 0, kind: input, shape index: {}]   ;;  %s1466_s1 = inlined_call_operand.vmem [shape: f32[8,6], index: 1, kind: input, shape index: {}]   ;;  %s1467_s2 = inlined_call_operand.vmem [shape: f32[7,24,8], index: 2, kind: input, shape index: {}]   ;;  %s1468_s3 = inlined_call_operand.vmem [shape: f32[8,6], index: 3, kind: input, shape index: {}]   ;;  %s1469_s4 = inlined_call_operand.hbm [shape: f32[32,64], index: 4, kind: output, shape index: {0}]   ;;  %s1470_s5 = inlined_call_operand.vmem [shape: f32[1,32,2], index: 5, kind: output, shape index: {1}]  }
   0x1   :  { %v1256_v0 = vld [vmem:[%s1465_s0] sm:$0x3f]  ;;  %1090 = vmatprep.subr.mxu0 %v1211_v2  ;;  %1092 = vmatprep.mubr.msk.f32.mxu0 %vm1212_vm1, %v1211_v2 }
   0x2   :  { %v35_v1 = vld [vmem:[%s1466_s1] sm:$0xff] }
   0x3   :  { %11 = vsyncpa [#allocation5], 0  ;;  %1091 = vmatpush3.msk.msra.mxu0 %vm40_vm0, %v1256_v0  ;;  %1095 = vmatprep.subr.mxu1 %v1211_v2  ;;  %s1213_s0 = smov 3   ;;  %s1214_s1 = smov 1   ;;  %vm135_vm3 = vcmask 64512   ;;  %v1011_v5 = vld [vmem:[%s1467_s2 + $0x48] sm:$0xff]  ;;  %v21_v7 = vlaneseq }
   0x4   :  { %1093 = vmatmul.mubr.msk.f32.vlgmr.msra.gmra.mxu0 %vm36_vm2, %v35_v1  ;;  %1106 = vmatprep.subr.mxu0 %v1211_v2  ;;  %v1012_v6 = vld [vmem:[%s1467_s2 + $0x50] sm:$0xff]  ;;  %v1013_v9 = vld [vmem:[%s1467_s2 + $0x58] sm:$0xff]  ;;  %vm118_vm4 = vcmask 547864   ;;  %vm848_vm5 = vcmask 529416   ;;  %v132_v15 = vld [vmem:[%s1467_s2] sm:$0xff]  ;;  %s1215_s30 = smov 124  }
   0x5   :  { %1097 = vmatprep.mubr.msk.f32.mxu1 %vm1212_vm1, %v1211_v2  ;;  %1108 = vmatprep.mubr.msk.f32.mxu0 %vm1212_vm1, %v1211_v2  ;;  %v22_v8 = vand.u32 127, %v21_v7  ;;  %s1216_s6 = smov 127   ;;  %v133_v16 = vld [vmem:[%s1467_s2 + $0x8] sm:$0xff]  ;;  %s1217_s9 = smov 122   ;;  %v134_v17 = vld [vmem:[%s1467_s2 + $0x10] sm:$0xff]  ;;  %v1021_v26 = vld [vmem:[%s1467_s2 + $0x18] sm:$0xff] }
   0x6   :  { %s1218_s10 = smov 126   ;;  %s1219_s13 = smov 123   ;;  %v1022_v30 = vld [vmem:[%s1467_s2 + $0x20] sm:$0xff]  ;;  %v1028_v31 = vld [vmem:[%s1467_s2 + $0x30] sm:$0xff]  ;;  %v1023_v33 = vld [vmem:[%s1467_s2 + $0x28] sm:$0xff]  ;;  %vm942_vm14 = vcmask 523264  }
   0x7   :  { %v1293_v10 = vand.u32 31, %v22_v8  ;;  %v1029_v34 = vld [vmem:[%s1467_s2 + $0x38] sm:$0xff]  ;;  %v1030_v37 = vld [vmem:[%s1467_s2 + $0x40] sm:$0xff]  ;;  %v1036_v44 = vld [vmem:[%s1467_s2 + $0x68] sm:$0xff] }
   0x8   :  { %v1035_v38 = vld [vmem:[%s1467_s2 + $0x60] sm:$0xff]  ;;  %v1042_v45 = vld [vmem:[%s1467_s2 + $0x78] sm:$0xff]  ;;  %v1037_v47 = vld [vmem:[%s1467_s2 + $0x70] sm:$0xff] }
   0x9   :  { %v124_v12 = vadd.s32 4294967293, %v1293_v10  ;;  %v314_v23 = vadd.s32 4294967294, %v1293_v10  ;;  %v527_v24 = vadd.s32 1, %v1293_v10  ;;  %v421_v25 = vadd.s32 4294967295, %v1293_v10  ;;  %v1043_v48 = vld [vmem:[%s1467_s2 + $0x80] sm:$0xff]  ;;  %v1044_v49 = vld [vmem:[%s1467_s2 + $0x88] sm:$0xff] }
   0xa   :  { %v633_v29 = vadd.s32 2, %v1293_v10  ;;  %v739_v36 = vadd.s32 3, %v1293_v10  ;;  %vm850_vm11 = vcmp.ge.s32.totalorder %v1293_v10, 1  ;;  %vm855_vm12 = vcmp.le.s32.totalorder %v1293_v10, 30  ;;  %v1049_v50 = vld [vmem:[%s1467_s2 + $0x90] sm:$0xff]  ;;  %v1050_v51 = vld [vmem:[%s1467_s2 + $0x98] sm:$0xff] }
   0xb   :  { %vm125_vm6 = vcmp.ge.s32.totalorder %v124_v12, 0  ;;  %vm315_vm7 = vcmp.ge.s32.totalorder %v314_v23, 0  ;;  %vm529_vm8 = vcmp.lt.s32.totalorder %v527_v24, 32  ;;  %vm422_vm9 = vcmp.ge.s32.totalorder %v421_v25, 0  ;;  %v865_v52 = vld [vmem:[%s1468_s3] sm:$0xff] }
   0xc   :  { %vm635_vm10 = vcmp.lt.s32.totalorder %v633_v29, 32  ;;  %vm741_vm13 = vcmp.lt.s32.totalorder %v739_v36, 32  ;;  %v1051_v53 = vld [vmem:[%s1467_s2 + $0xa0] sm:$0xff]  ;;  %s1220_s2 = smov [#allocation4]  }
   0xd   :  { %s994_s3 = sshll.u32 %s1220_s2, 4  ;;  %s995_s3 = int_to_ptr.vmem [resolvable:$true] %s994_s3 }
   0xe   :  { %s1189_s19 = scalar_lea.vmem %s995_s3, 512  ;;  %p1194_p1 = scmp.lt.s32.totalorder %s995_s3, %s995_s3 }
   0xf   :  { %p1190_p0 = scmp.ne.s32.totalorder %s995_s3, %s1189_s19  ;;  %p1195_p2 = scmp.lt.s32.totalorder %s1189_s19, %s1189_s19 }
  0x11   :  { %p1196_p3 = por %p1195_p2, %p1194_p1 }
  0x13   :  { %p1197_p4 = pnand %p1196_p3, %p1190_p0 }
  0xc4   :  { %v110_v3 = vpop.f32.mrf.mxu0 }
  0xc5   :  { %115 = vrot.lane.b32.xlu0 %v110_v3, %s1213_s0  ;;  %1107 = vmatpush3.msra.mxu0 %v110_v3 }
  0xc6   :  { %v1094_v4 = vpop.f32.mrf.mxu0  ;;  %1128 = vmatprep.subr.mxu0 %v1211_v2  ;;  %1109 = vmatmul.mubr.msk.f32.vlgmr.msra.gmra.mxu0 %vm135_vm3, %v1011_v5 }
  0xc7   :  { %1111 = vmatprep.mubr.msk.f32.mxu0 %vm1212_vm1, %v1211_v2 }
  0xc9   :  { %845 = vrot.lane.b32.xlu0 %v1256_v0, %s1214_s1 }
  0xca   :  { %1112 = vmatmul.mubr.msk.f32.gmra.mxu0 %vm135_vm3, %v1012_v6 }
  0xcb   :  { %1114 = vmatprep.mubr.msk.f32.mxu0 %vm1212_vm1, %v1211_v2 }
  0xce   :  { %1115 = vmatmul.mubr.msk.f32.gmra.mxu0 %vm135_vm3, %v1013_v9 }
  0xcf   :  { %1130 = vmatprep.mubr.msk.f32.mxu0 %vm1212_vm1, %v1211_v2 }
 0x137   :  { %v116_v11 = vpop.permute.xlu0 %115 }
 0x138   :  { %119 = vst.msk [vmem:[#allocation2] sm:$0xff] %vm118_vm4, %v116_v11 }
 0x13b   :  { %v846_v13 = vpop.permute.xlu0 %845 }
 0x13c   :  { %849 = vst.msk [vmem:[#allocation3] sm:$0x3f] %vm848_vm5, %v846_v13 }
 0x13f   :  { %v128_v14 = vld [vmem:[#allocation2] sm:$0xff] }
 0x140   :  { %533 = vrot.lane.b32.xlu0 %v128_v14, %s1215_s30  ;;  %321 = vrot.lane.b32.xlu1 %v128_v14, %s1216_s6 }
 0x141   :  { %1096 = vmatpush3.msk.msra.mxu1 %vm125_vm6, %v128_v14 }
 0x142   :  { %1098 = vmatmul.mubr.msk.f32.vlgmr.msra.gmra.mxu1 %vm135_vm3, %v132_v15  ;;  %1117 = vmatprep.subr.mxu1 %v1211_v2 }
 0x143   :  { %1100 = vmatprep.mubr.msk.f32.mxu1 %vm1212_vm1, %v1211_v2  ;;  %v851_v18 = vld [vmem:[#allocation3] sm:$0x3f] }
 0x144   :  { %745 = vrot.lane.b32.xlu0 %v128_v14, %s1217_s9  ;;  %427 = vrot.lane.b32.xlu1 %v128_v14, %s1218_s10  ;;  %v854_v39 = vsel %vm850_vm11, %v851_v18, -inf }
 0x145   :  { %v863_v43 = vmax.f32 %v854_v39, %v1256_v0 }
 0x146   :  { %1101 = vmatmul.mubr.msk.f32.gmra.mxu1 %vm135_vm3, %v133_v16 }
 0x147   :  { %1103 = vmatprep.mubr.msk.f32.mxu1 %vm1212_vm1, %v1211_v2 }
 0x148   :  { %639 = vrot.lane.b32.xlu1 %v128_v14, %s1219_s13 }
 0x14a   :  { %1104 = vmatmul.mubr.msk.f32.gmra.mxu1 %vm135_vm3, %v134_v17 }
 0x14b   :  { %1119 = vmatprep.mubr.msk.f32.mxu1 %vm1212_vm1, %v1211_v2 }
 0x14c   :  { %859 = vrot.lane.b32.xlu1 %v851_v18, %s1218_s10 }
 0x186   :  { %v1315_v19 = vpop.f32.mrf.mxu0 }
 0x188   :  { %v1110_v20 = vpop.f32.mrf.mxu0 }
 0x18a   :  { %v1317_v21 = vpop.f32.mrf.mxu0 }
 0x18c   :  { %v1113_v22 = vpop.f32.mrf.mxu0 }
 0x18e   :  { %v310_v54 = vpop.f32.mrf.mxu0 }
 0x190   :  { %v1116_v55 = vpop.f32.mrf.mxu0 }
 0x1b2   :  { %v322_v27 = vpop.permute.xlu1 %321  ;;  %v534_v28 = vpop.permute.xlu0 %533 }
 0x1b3   :  { %1118 = vmatpush3.msk.msra.mxu1 %vm315_vm7, %v322_v27 }
 0x1b4   :  { %1120 = vmatmul.mubr.msk.f32.vlgmr.msra.gmra.mxu1 %vm135_vm3, %v1021_v26  ;;  %1139 = vmatprep.subr.mxu1 %v1211_v2 }
 0x1b5   :  { %1140 = vmatpush3.msk.msra.mxu1 %vm529_vm8, %v534_v28  ;;  %1122 = vmatprep.mubr.msk.f32.mxu1 %vm1212_vm1, %v1211_v2 }
 0x1b6   :  { %v428_v32 = vpop.permute.xlu1 %427  ;;  %1161 = vmatprep.subr.mxu1 %v1211_v2  ;;  %v746_v41 = vpop.permute.xlu0 %745 }
 0x1b7   :  { %1129 = vmatpush3.msk.msra.mxu0 %vm422_vm9, %v428_v32 }
 0x1b8   :  { %1123 = vmatmul.mubr.msk.f32.gmra.mxu1 %vm135_vm3, %v1022_v30  ;;  %1131 = vmatmul.mubr.msk.f32.vlgmr.msra.gmra.mxu0 %vm135_vm3, %v1028_v31 }
 0x1b9   :  { %1150 = vmatprep.subr.mxu0 %v1211_v2  ;;  %1125 = vmatprep.mubr.msk.f32.mxu1 %vm1212_vm1, %v1211_v2 }
 0x1ba   :  { %v640_v35 = vpop.permute.xlu1 %639  ;;  %1133 = vmatprep.mubr.msk.f32.mxu0 %vm1212_vm1, %v1211_v2 }
 0x1bb   :  { %1151 = vmatpush3.msk.msra.mxu0 %vm635_vm10, %v640_v35 }
 0x1bc   :  { %1126 = vmatmul.mubr.msk.f32.gmra.mxu1 %vm135_vm3, %v1023_v33  ;;  %1134 = vmatmul.mubr.msk.f32.gmra.mxu0 %vm135_vm3, %v1029_v34 }
 0x1bd   :  { %1136 = vmatprep.mubr.msk.f32.mxu0 %vm1212_vm1, %v1211_v2  ;;  %1141 = vmatprep.mubr.msk.f32.mxu1 %vm1212_vm1, %v1211_v2 }
 0x1be   :  { %v860_v40 = vpop.permute.xlu1 %859  ;;  %1172 = vmatprep.subr.mxu0 %v1211_v2 }
 0x1bf   :  { %v862_v42 = vsel %vm855_vm12, %v860_v40, -inf }
 0x1c0   :  { %1137 = vmatmul.mubr.msk.f32.gmra.mxu0 %vm135_vm3, %v1030_v37  ;;  %1142 = vmatmul.mubr.msk.f32.vlgmr.msra.gmra.mxu1 %vm135_vm3, %v1035_v38  ;;  %v864_v46 = vmax.f32 %v863_v43, %v862_v42 }
 0x1c1   :  { %1162 = vmatpush3.msk.msra.mxu1 %vm741_vm13, %v746_v41  ;;  %1144 = vmatprep.mubr.msk.f32.mxu1 %vm1212_vm1, %v1211_v2 }
 0x1c2   :  { %1152 = vmatprep.mubr.msk.f32.mxu0 %vm1212_vm1, %v1211_v2 }
 0x1c4   :  { %1145 = vmatmul.mubr.msk.f32.gmra.mxu1 %vm135_vm3, %v1036_v44  ;;  %1153 = vmatmul.mubr.msk.f32.vlgmr.msra.gmra.mxu0 %vm135_vm3, %v1042_v45 }
 0x1c5   :  { %1173 = vmatpush3.msk.msra.mxu0 %vm40_vm0, %v864_v46  ;;  %1147 = vmatprep.mubr.msk.f32.mxu1 %vm1212_vm1, %v1211_v2 }
 0x1c6   :  { %1155 = vmatprep.mubr.msk.f32.mxu0 %vm1212_vm1, %v1211_v2 }
 0x1c8   :  { %1148 = vmatmul.mubr.msk.f32.gmra.mxu1 %vm135_vm3, %v1037_v47  ;;  %1156 = vmatmul.mubr.msk.f32.gmra.mxu0 %vm135_vm3, %v1043_v48 }
 0x1c9   :  { %1158 = vmatprep.mubr.msk.f32.mxu0 %vm1212_vm1, %v1211_v2  ;;  %1163 = vmatprep.mubr.msk.f32.mxu1 %vm1212_vm1, %v1211_v2 }
 0x1cc   :  { %1159 = vmatmul.mubr.msk.f32.gmra.mxu0 %vm135_vm3, %v1044_v49  ;;  %1164 = vmatmul.mubr.msk.f32.vlgmr.msra.gmra.mxu1 %vm135_vm3, %v1049_v50 }
 0x1cd   :  { %1166 = vmatprep.mubr.msk.f32.mxu1 %vm1212_vm1, %v1211_v2  ;;  %1174 = vmatprep.mubr.msk.f32.mxu0 %vm1212_vm1, %v1211_v2 }
 0x1d0   :  { %1167 = vmatmul.mubr.msk.f32.gmra.mxu1 %vm135_vm3, %v1050_v51  ;;  %1175 = vmatmul.mubr.msk.f32.vlgmr.msra.gmra.mxu0 %vm36_vm2, %v865_v52 }
 0x1d1   :  { %1169 = vmatprep.mubr.msk.f32.mxu1 %vm1212_vm1, %v1211_v2 }
 0x1d4   :  { %1170 = vmatmul.mubr.msk.f32.gmra.mxu1 %vm135_vm3, %v1051_v53 }
 0x202   :  { %v211_v56 = vpop.f32.mrf.mxu1 }
 0x203   :  { %v301_v13 = vadd.f32 %v1315_v19, %v211_v56 }
 0x204   :  { %v1099_v57 = vpop.f32.mrf.mxu1 }
 0x206   :  { %v216_v58 = vpop.f32.mrf.mxu1 }
 0x207   :  { %v306_v20 = vadd.f32 %v1317_v21, %v216_v58 }
 0x208   :  { %v1102_v59 = vpop.f32.mrf.mxu1 }
 0x20a   :  { %v221_v60 = vpop.f32.mrf.mxu1 }
 0x20b   :  { %v311_v61 = vadd.f32 %v310_v54, %v221_v60 }
 0x20c   :  { %v1105_v62 = vpop.f32.mrf.mxu1 }
 0x274   :  { %v404_v63 = vpop.f32.mrf.mxu1 }
 0x275   :  { %v418_v16 = vadd.f32 %v404_v63, %v301_v13 }
 0x276   :  { %v1121_v0 = vpop.f32.mrf.mxu1 }
 0x278   :  { %v409_v1 = vpop.f32.mrf.mxu1  ;;  %v510_v3 = vpop.f32.mrf.mxu0 }
 0x279   :  { %v524_v22 = vadd.f32 %v510_v3, %v418_v16  ;;  %v419_v25 = vadd.f32 %v409_v1, %v306_v20 }
 0x27a   :  { %v1124_v2 = vpop.f32.mrf.mxu1  ;;  %v1132_v4 = vpop.f32.mrf.mxu0 }
 0x27c   :  { %v414_v5 = vpop.f32.mrf.mxu1  ;;  %v515_v6 = vpop.f32.mrf.mxu0 }
 0x27d   :  { %v525_v29 = vadd.f32 %v515_v6, %v419_v25  ;;  %v420_v19 = vadd.f32 %v414_v5, %v311_v61 }
 0x27e   :  { %v1127_v7 = vpop.f32.mrf.mxu1  ;;  %v1135_v8 = vpop.f32.mrf.mxu0 }
 0x280   :  { %v520_v9 = vpop.f32.mrf.mxu0  ;;  %v616_v10 = vpop.f32.mrf.mxu1 }
 0x281   :  { %v630_v26 = vadd.f32 %v616_v10, %v524_v22  ;;  %v526_v37 = vadd.f32 %v520_v9, %v420_v19 }
 0x282   :  { %v1138_v11 = vpop.f32.mrf.mxu0  ;;  %v1143_v12 = vpop.f32.mrf.mxu1 }
 0x284   :  { %v621_v14 = vpop.f32.mrf.mxu1  ;;  %v722_v15 = vpop.f32.mrf.mxu0 }
 0x285   :  { %v736_v30 = vadd.f32 %v722_v15, %v630_v26  ;;  %v631_v33 = vadd.f32 %v621_v14, %v525_v29 }
 0x286   :  { %v1146_v17 = vpop.f32.mrf.mxu1  ;;  %v1154_v18 = vpop.f32.mrf.mxu0 }
 0x288   :  { %v626_v23 = vpop.f32.mrf.mxu1  ;;  %v727_v24 = vpop.f32.mrf.mxu0 }
 0x289   :  { %v737_v38 = vadd.f32 %v727_v24, %v631_v33  ;;  %v632_v40 = vadd.f32 %v626_v23, %v526_v37 }
 0x28a   :  { %v1149_v27 = vpop.f32.mrf.mxu1  ;;  %v1157_v28 = vpop.f32.mrf.mxu0 }
 0x28c   :  { %v732_v31 = vpop.f32.mrf.mxu0  ;;  %v828_v32 = vpop.f32.mrf.mxu1 }
 0x28d   :  { %v842_v34 = vadd.f32 %v828_v32, %v736_v30  ;;  %v738_v44 = vadd.f32 %v732_v31, %v632_v40 }
 0x28e   :  { %v1160_v35 = vpop.f32.mrf.mxu0  ;;  %v1165_v36 = vpop.f32.mrf.mxu1 }
 0x28f   :  { %943 = vst.msk [vmem:[#allocation4] sm:$0xff] %vm942_vm14, %v842_v34 }
 0x290   :  { %v833_v21 = vpop.f32.mrf.mxu1  ;;  %v938_v39 = vpop.f32.mrf.mxu0 }
 0x291   :  { %v843_v41 = vadd.f32 %v833_v21, %v737_v38  ;;  %946 = vst.msk [vmem:[#allocation4 + $0x18] sm:$0xff] %vm942_vm14, %v938_v39 }
 0x292   :  { %v1168_v42 = vpop.f32.mrf.mxu1  ;;  %v1176_v43 = vpop.f32.mrf.mxu0 }
 0x293   :  { %944 = vst.msk [vmem:[#allocation4 + $0x8] sm:$0xff] %vm942_vm14, %v843_v41 }
 0x294   :  { %v838_v45 = vpop.f32.mrf.mxu1 }
 0x295   :  { %v844_v46 = vadd.f32 %v838_v45, %v738_v44 }
 0x296   :  { %v947_v47 = vld [vmem:[#allocation4] sm:$0xff]  ;;  %v1171_v48 = vpop.f32.mrf.mxu1 }
 0x297   :  { %945 = vst.msk [vmem:[#allocation4 + $0x10] sm:$0xff] %vm942_vm14, %v844_v46  ;;  %v968_v49 = vmul.f32 %v947_v47, %v947_v47  ;;  %v951_v55 = vsel %vm942_vm14, %v947_v47, 0.0 }
 0x298   :  { %v950_v50 = vld [vmem:[#allocation4 + $0x18] sm:$0xff] }
 0x299   :  { %v972_v51 = vsel %vm942_vm14, %v968_v49, 0.0  ;;  %v960_v52 = vsel %vm942_vm14, %v950_v50, 0.0  ;;  %v971_v62 = vmul.f32 %v950_v50, %v950_v50 }
 0x29a   :  { %973 = vadd.xlane.f32.xlu1 %v972_v51  ;;  %961 = vadd.xlane.f32.xlu0 %v960_v52  ;;  %v948_v53 = vld [vmem:[#allocation4 + $0x8] sm:$0xff] }
 0x29b   :  { %v954_v54 = vsel %vm942_vm14, %v948_v53, 0.0  ;;  %v969_v56 = vmul.f32 %v948_v53, %v948_v53  ;;  %v981_v63 = vsel %vm942_vm14, %v971_v62, 0.0 }
 0x29d   :  { %v975_v60 = vsel %vm942_vm14, %v969_v56, 0.0 }
 0x29e   :  { %955 = vadd.xlane.f32.xlu1 %v954_v54  ;;  %952 = vadd.xlane.f32.xlu0 %v951_v55  ;;  %v949_v57 = vld [vmem:[#allocation4 + $0x10] sm:$0xff] }
 0x29f   :  { %v970_v58 = vmul.f32 %v949_v57, %v949_v57  ;;  %v957_v61 = vsel %vm942_vm14, %v949_v57, 0.0 }
 0x2a1   :  { %v978_v59 = vsel %vm942_vm14, %v970_v58, 0.0 }
 0x2a2   :  { %979 = vadd.xlane.f32.xlu1 %v978_v59  ;;  %976 = vadd.xlane.f32.xlu0 %v975_v60 }
 0x2a6   :  { %958 = vadd.xlane.f32.xlu0 %v957_v61 }
 0x2aa   :  { %982 = vadd.xlane.f32.xlu0 %v981_v63 }
 0x2ab   :  { %1200 = shalt.err (!%p1197_p4)
}
 0x2ac   :  { %s1221_s20 = smov 128   ;;  %s1222_s21 = smov 8   ;;  %vm963_vm15 = vcmask 7168   ;;  %vm984_vm0 = vcmask 15368  }
 0x2ad   :  { %1000 = dma.vmem_to_hbm [thread:$0]  %s995_s3, 512, %s1469_s4, [#allocation5], %s1221_s20, %s1221_s20, %s1222_s21  }
 0x323   :  { %v974_v0 = vpop.xlane.xlu1 %973  ;;  %v962_v1 = vpop.xlane.xlu0 %961 }
 0x324   :  { %967 = vst.msk [vmem:[%s1470_s5 + $0x18] sm:$0xff] %vm963_vm15, %v962_v1 }
 0x327   :  { %v956_v3 = vpop.xlane.xlu1 %955  ;;  %v953_v2 = vpop.xlane.xlu0 %952 }
 0x328   :  { %965 = vst.msk [vmem:[%s1470_s5 + $0x8] sm:$0xff] %vm963_vm15, %v956_v3  ;;  %964 = vst.msk [vmem:[%s1470_s5] sm:$0xff] %vm963_vm15, %v953_v2 }
 0x329   :  { %985 = vst.msk [vmem:[%s1470_s5] sm:$0xff] %vm984_vm0, %v974_v0 }
 0x32b   :  { %v977_v4 = vpop.xlane.xlu0 %976  ;;  %v980_v6 = vpop.xlane.xlu1 %979 }
 0x32c   :  { %986 = vst.msk [vmem:[%s1470_s5 + $0x8] sm:$0xff] %vm984_vm0, %v977_v4 }
 0x32f   :  { %v959_v5 = vpop.xlane.xlu0 %958 }
 0x330   :  { %966 = vst.msk [vmem:[%s1470_s5 + $0x10] sm:$0xff] %vm963_vm15, %v959_v5 }
 0x331   :  { %987 = vst.msk [vmem:[%s1470_s5 + $0x10] sm:$0xff] %vm984_vm0, %v980_v6 }
 0x333   :  { %v983_v7 = vpop.xlane.xlu0 %982 }
 0x334   :  { %988 = vst.msk [vmem:[%s1470_s5 + $0x18] sm:$0xff] %vm984_vm0, %v983_v7 }
 0x335   :  { %1209 = dma.done.wait [#allocation5], 512  }
 0x336   :  { %1210 = vsyncadd [#allocation5], 4294966784 }
 0x337   :  { %1008 = vsyncpa [#allocation5], 1 }

</bundles_post_ra>
